<compile_context>
chip_gen: v5e
topology: v5e:2x2
jax: 0.10.0
libtpu: 0.0.40
codegen_flags: <defaults>
</compile_context>

<pallas_src>
import jax
import jax.numpy as jnp
from jax.experimental import pallas as pl
from jax.experimental.pallas import tpu as pltpu

_LANE_TARGET = 1024        # preferred lane width for flattened slabs (multiple of 128)
_MAX_FAST_LANE = 65536     # cap on using x's own last dim as the lane width
_TILE_BYTES_CAP = 4 << 20  # ~4 MiB row tiles (v6e-measured sweet spot; fits every gen)


def _round_up(a: int, m: int) -> int:
    return ((a + m - 1) // m) * m


def _round_down(a: int, m: int) -> int:
    return (a // m) * m


def _sublane(dtype) -> int:
    # f32 -> 8, bf16/f16 -> 16, int8/fp8 -> 32 (sub-32-bit dtypes pack along sublanes).
    return max(8, 32 // jnp.dtype(dtype).itemsize)


def _tile_budget_bytes() -> int:
    """Per-tile byte budget, generation aware (in + out, double-buffered => 4 live tiles)."""
    try:
        vmem = int(pltpu.get_tpu_info().vmem_capacity_bytes)
    except Exception:
        vmem = 64 << 20  # conservative fallback (v7x per-TC physical VMEM)
    return max(1 << 20, min(_TILE_BYTES_CAP, vmem // 16))


def _linreg_kernel(w_ref, b_ref, x_ref, o_ref):
    # w_ref, b_ref: (1,) SMEM scalars; x_ref / o_ref: (tm, lane) VMEM tiles.
    o_ref[...] = (w_ref[0] * x_ref[...] + b_ref[0]).astype(o_ref.dtype)


def _as_slab(x: jax.Array):
    """Present x as a lane-dense 2-D slab, padding only when unavoidable."""
    total = int(x.size)
    last = int(x.shape[-1]) if x.ndim >= 1 else 1

    # Fast path: last dim already lane-aligned -> pure reshape view, no pad, no slice.
    if last % 128 == 0 and 0 < last <= _MAX_FAST_LANE:
        rows = total // last
        return x.reshape(rows, last), rows, last, False

    flat = x.reshape(-1)
    # Still no-copy: any total that is a multiple of 128 gets a lane width dividing it.
    if total > 0 and total % 128 == 0:
        lane = 128
        while lane < _LANE_TARGET and total % (lane * 2) == 0:
            lane *= 2
        return flat.reshape(total // lane, lane), total // lane, lane, False

    # Ragged: pad the flat vector to whole lane-wide rows (<= lane-1 extra elements).
    lane = _LANE_TARGET
    rows = pl.cdiv(total, lane)
    flat = jnp.pad(flat, (0, rows * lane - total))
    return flat.reshape(rows, lane), rows, lane, True


def _pick_tm(rows: int, lane: int, dtype) -> int:
    sub = _sublane(dtype)
    if rows <= sub:
        return rows  # block equals the full first dim: single tile, rule-compliant
    itemsize = jnp.dtype(dtype).itemsize
    tm_max = max(sub, _round_down(_tile_budget_bytes() // (lane * itemsize), sub))
    # Aim for >= 4 row tiles so both v7x TensorCores get work and DMA overlaps compute.
    tm = _round_up(pl.cdiv(rows, 4), sub)
    return max(sub, min(tm, tm_max))


def linear_regression_forward(x: jax.Array, weights: jax.Array, bias: jax.Array) -> jax.Array:
    """y = weights * x + bias, with weights/bias of shape (1,) (PyTorch broadcast)."""
    assert weights.shape == (1,) and bias.shape == (1,)
    orig_shape = x.shape
    total = int(x.size)
    itemsize = jnp.dtype(x.dtype).itemsize

    slab, rows, lane, padded = _as_slab(x)
    tm = _pick_tm(rows, lane, x.dtype)
    grid = (pl.cdiv(rows, tm),)

    tile_bytes = tm * lane * itemsize
    # 2 double-buffered tiles each for input and output, plus slack; safe on every gen
    # (raises v5e's 16 MiB default scoped limit, stays well under v7x's 64 MiB physical).
    vmem_limit = int(min(64 << 20, max(32 << 20, 4 * tile_bytes + (4 << 20))))

    out = pl.pallas_call(
        _linreg_kernel,
        out_shape=jax.ShapeDtypeStruct((rows, lane), x.dtype),
        grid=grid,
        in_specs=[
            pl.BlockSpec(memory_space=pltpu.MemorySpace.SMEM),  # weights (1,)
            pl.BlockSpec(memory_space=pltpu.MemorySpace.SMEM),  # bias (1,)
            pl.BlockSpec((tm, lane), lambda i: (i, 0)),         # x row tile
        ],
        out_specs=pl.BlockSpec((tm, lane), lambda i: (i, 0)),   # y row tile
        compiler_params=pltpu.CompilerParams(
            dimension_semantics=("parallel",),  # shard row tiles across TCs (v7x)
            vmem_limit_bytes=vmem_limit,
        ),
        cost_estimate=pl.CostEstimate(
            flops=2 * rows * lane,
            transcendentals=0,
            bytes_accessed=2 * rows * lane * itemsize + 2 * jnp.dtype(weights.dtype).itemsize,
        ),
    )(weights, bias, slab)

    if padded:
        return out.reshape(-1)[:total].reshape(orig_shape)
    return out.reshape(orig_shape)


if __name__ == "__main__":
    key = jax.random.PRNGKey(0)
    kw, kb, kx = jax.random.split(key, 3)

    # Deterministic "randn"-style parameter init matching nn.Parameter(torch.randn(1)).
    weights = jax.random.normal(kw, (1,), dtype=jnp.float32)
    bias = jax.random.normal(kb, (1,), dtype=jnp.float32)

    # Primary small input; scalar weight/bias broadcast over all elements like PyTorch.
    x = jax.random.normal(kx, (8, 128), dtype=jnp.float32)
    y = jax.block_until_ready(linear_regression_forward(x, weights, bias))
    y_ref = weights[0] * x + bias[0]
    assert y.shape == x.shape and y.dtype == x.dtype
    assert jnp.allclose(y, y_ref, rtol=1e-6, atol=1e-6)

    # Exercise the no-pad flattened path (ragged last dim, total % 128 == 0).
    x2 = jax.random.normal(kx, (2, 4, 16, 16), dtype=jnp.float32)
    y2 = jax.block_until_ready(linear_regression_forward(x2, weights, bias))
    assert jnp.allclose(y2, weights[0] * x2 + bias[0], rtol=1e-6, atol=1e-6)

    # Exercise the padded / boundary-masked path (truly ragged total).
    x3 = jax.random.normal(kx, (5, 37), dtype=jnp.float32)
    y3 = jax.block_until_ready(linear_regression_forward(x3, weights, bias))
    assert jnp.allclose(y3, weights[0] * x3 + bias[0], rtol=1e-6, atol=1e-6)

    print("KERNEL_OK")
</pallas_src>

<mosaic_0001>
module attributes {stable_mosaic.version = 11 : i64} {
  func.func @_linreg_kernel(%arg0: i32, %arg1: memref<1xf32, #tpu.memory_space<smem>>, %arg2: memref<1xf32, #tpu.memory_space<smem>>, %arg3: memref<8x128xf32, #tpu.memory_space<vmem>>, %arg4: memref<8x128xf32, #tpu.memory_space<vmem>>) attributes {dimension_semantics = [#tpu.dimension_semantics<parallel>], iteration_bounds = array<i64: 1>, scalar_prefetch = 0 : i64, scratch_operands = 0 : i64, tpu.core_type = #tpu.core_type<tc>, window_params = [{transform_indices = @transform_0, window_bounds = array<i64: 1>}, {transform_indices = @transform_1, window_bounds = array<i64: 1>}, {transform_indices = @transform_2, window_bounds = array<i64: 8, 128>}, {transform_indices = @transform_3, window_bounds = array<i64: 8, 128>}]} {
    %c0 = arith.constant 0 : index
    %0 = memref.load %arg1[%c0] : memref<1xf32, #tpu.memory_space<smem>>
    %c0_0 = arith.constant 0 : index
    %c0_1 = arith.constant 0 : index
    %1 = vector.load %arg3[%c0_0, %c0_1] : memref<8x128xf32, #tpu.memory_space<vmem>>, vector<8x128xf32>
    %2 = vector.broadcast %0 : f32 to vector<8x128xf32>
    %3 = arith.mulf %2, %1 : vector<8x128xf32>
    %c0_2 = arith.constant 0 : index
    %4 = memref.load %arg2[%c0_2] : memref<1xf32, #tpu.memory_space<smem>>
    %5 = vector.broadcast %4 : f32 to vector<8x128xf32>
    %6 = arith.addf %3, %5 : vector<8x128xf32>
    %c0_3 = arith.constant 0 : index
    %c0_4 = arith.constant 0 : index
    %7 = vector.load %arg4[%c0_3, %c0_4] : memref<8x128xf32, #tpu.memory_space<vmem>>, vector<8x128xf32>
    tpu.vector_store %arg4[%c0_3, %c0_4], %6 {strides = array<i32>} : memref<8x128xf32, #tpu.memory_space<vmem>>, vector<8x128xf32>,
    return
  }
  func.func @transform_0(%arg0: i32) -> i32 {
    %c0_i32 = arith.constant 0 : i32
    %c0_i32_0 = arith.constant 0 : i32
    return %c0_i32 : i32
  }
  func.func @transform_1(%arg0: i32) -> i32 {
    %c0_i32 = arith.constant 0 : i32
    %c0_i32_0 = arith.constant 0 : i32
    return %c0_i32 : i32
  }
  func.func @transform_2(%arg0: i32) -> (i32, i32) {
    %c0_i32 = arith.constant 0 : i32
    %c0_i32_0 = arith.constant 0 : i32
    return %arg0, %c0_i32 : i32, i32
  }
  func.func @transform_3(%arg0: i32) -> (i32, i32) {
    %c0_i32 = arith.constant 0 : i32
    %c0_i32_0 = arith.constant 0 : i32
    return %arg0, %c0_i32 : i32, i32
  }
}

</mosaic_0001>

<bundles_post_ra>
// kernel: tpu_custom_call.1
= control target key start
LH: loop header
LB: loop body
LE: loop exit
PB: predicated region body
PF: predicated region fallthrough
CT: control target
= control target key end

     0   :  { %10 = vsyncpa [#allocation5], 0  ;;  %s144_s0 = inlined_call_operand.<no memory space> [shape: f32[1], index: 0, kind: input, shape index: {}]   ;;  %s145_s1 = inlined_call_operand.<no memory space> [shape: f32[1], index: 1, kind: input, shape index: {}]   ;;  %s146_s2 = inlined_call_operand.hbm [shape: f32[8,128], index: 2, kind: input, shape index: {}]   ;;  %s147_s3 = inlined_call_operand.hbm [shape: f32[8,128], index: 3, kind: output, shape index: {}]  }
   0x1   :  { %11 = vsyncpa [#allocation6], 0  ;;  %s21_s14 = sshll.u32 %s146_s2, 4  ;;  %s110_s15 = smov [#allocation4]   ;;  %s22_s14 = int_to_ptr.hbm [resolvable:$true] %s21_s14 }
   0x2   :  { %s23_s16 = sshll.u32 %s110_s15, 4  ;;  %s24_s16 = int_to_ptr.vmem [resolvable:$true] %s23_s16 }
   0x3   :  { %26 = dma.hbm_to_vmem [thread:$0]  %s22_s14, 128, %s24_s16, [#allocation5]  }
   0x4   :  { %106 = dma.done.wait [#allocation5], 128  }
   0x5   :  { %107 = vsyncadd [#allocation5], 4294967168  ;;  %v33_v0 = vstv %s144_s0  ;;  %v32_v1 = vld [vmem:[#allocation4] sm:$0xff]  ;;  %v36_v2 = vstv %s145_s1  ;;  %s111_s21 = smov [#allocation7]   ;;  %s46_s24 = sshll.u32 %s147_s3, 4  ;;  %s47_s24 = int_to_ptr.hbm [resolvable:$true] %s46_s24 }
   0x6   :  { %s44_s22 = sshll.u32 %s111_s21, 4  ;;  %v34_v3 = vmul.f32 %v33_v0, %v32_v1  ;;  %s45_s22 = int_to_ptr.vmem [resolvable:$true] %s44_s22 }
   0x8   :  { %v37_v4 = vadd.f32 %v36_v2, %v34_v3 }
   0xa   :  { %38 = vst [vmem:[#allocation7] sm:$0xff] %v37_v4 }
   0xb   :  { %49 = dma.vmem_to_hbm [thread:$0]  %s45_s22, 128, %s47_s24, [#allocation6]  }
   0xc   :  { %108 = dma.done.wait [#allocation6], 128  }
   0xd   :  { %109 = vsyncadd [#allocation6], 4294967168 }
   0xe   :  { %54 = vsyncpa [#allocation5], 1 }
   0xf   :  { %55 = vsyncpa [#allocation6], 1 }

</bundles_post_ra>
